<compile_context>
chip_gen: v7x
topology: tpu7x:2x2x1
jax: 0.10.0
libtpu: 0.0.40
codegen_flags: <defaults>
</compile_context>

<pallas_src>
from functools import partial

import jax
import jax.numpy as jnp
from jax.experimental import pallas as pl
from jax.experimental.pallas import tpu as pltpu

_LANE = 128
_SUBLANE = 8


def _round_up(x, m):
    return (x + m - 1) // m * m


# -----------------------------------------------------------------------------
# Fused kernel: both LSTM recurrences (combined block-diagonal) + final linear.
# -----------------------------------------------------------------------------
def _fused_kernel(gx_ref, lens_ref, whh_ref, lin_w_ref, lin_b_ref, out_ref):
    # gx_ref   : (Tmax*Bp, 8H) f32  time-major pre-projected gate inputs
    #            (includes biases; g-gate columns pre-scaled by 2),
    #            combined lane layout [i_q|i_d|f_q|f_d|g_q|g_d|o_q|o_d].
    # lens_ref : (Bp, 2H) int32 — q lengths broadcast over lanes [0:H),
    #            d lengths over [H:2H).
    # whh_ref  : (2H, 8H) bf16 — block-diagonal recurrent weights, same layout,
    #            g-gate columns pre-scaled by 2.
    # lin_w_ref: (2H, OUTp) bf16 — final linear, rows reordered so that
    #            [h_q | h_d] @ lin_w == concat([d_h, q_h]) @ W_lin^T.
    # lin_b_ref: (1, OUTp) f32
    # out_ref  : (Bp, OUTp) f32
    bp = lens_ref.shape[0]
    two_h = lens_ref.shape[1]
    t_total = gx_ref.shape[0] // bp

    lens = lens_ref[...]        # (Bp, 2H)  hoisted
    w_hh = whh_ref[...]         # (2H, 8H)  stays resident across all steps

    h = jnp.zeros((bp, two_h), jnp.float32)   # [h_q | h_d]
    c = jnp.zeros((bp, two_h), jnp.float32)   # [c_q | c_d]

    # Fully unrolled combined recurrence: ONE matmul + ONE full-width sigmoid
    # per step covers both encoders.  gx slices are static, sublane-aligned
    # VMEM loads (off the dependent chain).
    for t in range(t_total):
        g_x = gx_ref[t * bp:(t + 1) * bp, :]                     # (Bp, 8H) f32
        gates = g_x + jnp.dot(h.astype(jnp.bfloat16), w_hh,
                              preferred_element_type=jnp.float32)
        sig = jax.nn.sigmoid(gates)                              # one EUP pass
        i_g = sig[:, 0 * two_h:1 * two_h]
        f_g = sig[:, 1 * two_h:2 * two_h]
        g_g = 2.0 * sig[:, 2 * two_h:3 * two_h] - 1.0            # tanh via 2*sig(2z)-1
        o_g = sig[:, 3 * two_h:4 * two_h]
        c_new = f_g * c + i_g * g_g
        h_new = o_g * jnp.tanh(c_new)
        # Packed-sequence semantics: only advance while t < length[b] (per encoder).
        valid = t < lens                                         # (Bp, 2H) bool
        c = jnp.where(valid, c_new, c)
        h = jnp.where(valid, h_new, h)

    out = (jnp.dot(h.astype(jnp.bfloat16), lin_w_ref[...],
                   preferred_element_type=jnp.float32) + lin_b_ref[...])
    out_ref[...] = out                                           # unmasked (8,128) store


# -----------------------------------------------------------------------------
# Parameter preparation (done once, outside the per-call path).
# -----------------------------------------------------------------------------
def prepare_params(params):
    H = params["q_w_hh_t"].shape[0]
    OUT = params["lin_w_t"].shape[1]
    out_pad = _round_up(OUT, _LANE)

    # Pre-projected embedding tables, widened to the combined 8H gate layout
    # [i_q|i_d|f_q|f_d|g_q|g_d|o_q|o_d]; the other encoder's lanes are zero so
    # per call we can simply add the two gathered tables.  g-gate columns x2
    # (tanh-as-sigmoid rescale), bias folded in.
    def proj_table_wide(emb, w_ih_t, b, slot):
        tab = emb @ w_ih_t + b                       # (V, 4H) f32, bias included
        v = tab.shape[0]
        z = jnp.zeros((v, H), jnp.float32)
        blocks = []
        for g in range(4):
            blk = tab[:, g * H:(g + 1) * H]
            if g == 2:
                blk = blk * 2.0
            blocks.extend([blk, z] if slot == 0 else [z, blk])
        return jnp.concatenate(blocks, axis=1)       # (V, 8H) f32

    q_tab = proj_table_wide(params["q_embedding"], params["q_w_ih_t"],
                            params["q_b"], slot=0)
    d_tab = proj_table_wide(params["d_embedding"], params["d_w_ih_t"],
                            params["d_b"], slot=1)

    # Block-diagonal recurrent weights in the same combined gate layout.
    zeros = jnp.zeros((H, H), jnp.float32)

    def blk(wq_g, wd_g, scale=1.0):
        top = jnp.concatenate([wq_g * scale, zeros], axis=1)   # h_q rows
        bot = jnp.concatenate([zeros, wd_g * scale], axis=1)   # h_d rows
        return jnp.concatenate([top, bot], axis=0)             # (2H, 2H)

    qw, dw = params["q_w_hh_t"], params["d_w_hh_t"]            # (H, 4H)
    whh_cat = jnp.concatenate([
        blk(qw[:, 0 * H:1 * H], dw[:, 0 * H:1 * H]),
        blk(qw[:, 1 * H:2 * H], dw[:, 1 * H:2 * H]),
        blk(qw[:, 2 * H:3 * H], dw[:, 2 * H:3 * H], 2.0),
        blk(qw[:, 3 * H:4 * H], dw[:, 3 * H:4 * H]),
    ], axis=1).astype(jnp.bfloat16)                            # (2H, 8H)

    # Final linear: torch computes concat([d_h, q_h]) @ W^T; kernel carries
    # [h_q | h_d], so swap the row blocks of the (2H, OUT) transposed weight.
    lw = params["lin_w_t"]
    lin_w_cat = jnp.concatenate([lw[H:2 * H, :], lw[0:H, :]], axis=0)
    lin_w_cat = jnp.pad(lin_w_cat,
                        ((0, 0), (0, out_pad - OUT))).astype(jnp.bfloat16)
    lin_b = jnp.pad(params["lin_b"],
                    (0, out_pad - OUT)).reshape(1, out_pad).astype(jnp.float32)

    return {"q_tab": q_tab, "d_tab": d_tab, "whh_cat": whh_cat,
            "lin_w": lin_w_cat, "lin_b": lin_b}


# -----------------------------------------------------------------------------
# Forward wrapper: token gather + tiny padding glue in XLA, one pallas_call.
# -----------------------------------------------------------------------------
@partial(jax.jit, static_argnames=("out_dim",))
def description_baseline_forward(prep, questions, questions_l,
                                 descriptions, descriptions_l, *, out_dim):
    B, Tq = questions.shape
    _, Td = descriptions.shape
    H = prep["whh_cat"].shape[0] // 2
    out_pad = prep["lin_w"].shape[1]
    t_max = max(Tq, Td)
    b_pad = _round_up(B, _SUBLANE)

    # Time-major padded tokens (padded positions use row 0 of the tables; their
    # contribution is masked out by the length comparison in the kernel).
    def pad_tm(tokens, t_len):
        t = jnp.pad(tokens, ((0, b_pad - B), (0, t_max - t_len)))
        return jnp.transpose(t, (1, 0))                          # (Tmax, Bp)

    q_tok = pad_tm(questions, Tq)
    d_tok = pad_tm(descriptions, Td)
    # Pre-projected gate inputs: two tiny gathers + one add, no matmuls.
    gx = (prep["q_tab"][q_tok] + prep["d_tab"][d_tok])           # (Tmax, Bp, 8H)
    gx = gx.reshape(t_max * b_pad, 8 * H).astype(jnp.float32)

    q_l = jnp.pad(questions_l.astype(jnp.int32), (0, b_pad - B))
    d_l = jnp.pad(descriptions_l.astype(jnp.int32), (0, b_pad - B))
    lens_cat = jnp.concatenate(
        [jnp.broadcast_to(q_l[:, None], (b_pad, H)),
         jnp.broadcast_to(d_l[:, None], (b_pad, H))], axis=1)    # (Bp, 2H) int32

    vmem = pl.BlockSpec(memory_space=pltpu.MemorySpace.VMEM)
    out = pl.pallas_call(
        _fused_kernel,
        out_shape=jax.ShapeDtypeStruct((b_pad, out_pad), jnp.float32),
        in_specs=[vmem] * 5,
        out_specs=vmem,
    )(gx, lens_cat, prep["whh_cat"], prep["lin_w"], prep["lin_b"])
    return out[:B, :out_dim]


# -----------------------------------------------------------------------------
# Pure-JAX f32 reference (for correctness check).
# -----------------------------------------------------------------------------
def _lstm_ref(x_tbe, lens, w_ih_t, w_hh_t, b):
    T, B, _ = x_tbe.shape
    H = w_hh_t.shape[0]

    def step(carry, inp):
        h, c = carry
        x_t, t = inp
        gates = x_t @ w_ih_t + h @ w_hh_t + b
        i_g = jax.nn.sigmoid(gates[:, 0 * H:1 * H])
        f_g = jax.nn.sigmoid(gates[:, 1 * H:2 * H])
        g_g = jnp.tanh(gates[:, 2 * H:3 * H])
        o_g = jax.nn.sigmoid(gates[:, 3 * H:4 * H])
        c_new = f_g * c + i_g * g_g
        h_new = o_g * jnp.tanh(c_new)
        valid = (t < lens)[:, None]
        return (jnp.where(valid, h_new, h), jnp.where(valid, c_new, c)), None

    (h, _), _ = jax.lax.scan(
        step,
        (jnp.zeros((B, H), jnp.float32), jnp.zeros((B, H), jnp.float32)),
        (x_tbe, jnp.arange(T)))
    return h


def _forward_ref(params, questions, questions_l, descriptions, descriptions_l):
    q_tbe = jnp.transpose(params["q_embedding"][questions], (1, 0, 2))
    d_tbe = jnp.transpose(params["d_embedding"][descriptions], (1, 0, 2))
    q_hid = _lstm_ref(q_tbe, questions_l, params["q_w_ih_t"],
                      params["q_w_hh_t"], params["q_b"])
    d_hid = _lstm_ref(d_tbe, descriptions_l, params["d_w_ih_t"],
                      params["d_w_hh_t"], params["d_b"])
    hid = jnp.concatenate([d_hid, q_hid], axis=1)
    return hid @ params["lin_w_t"] + params["lin_b"]


# -----------------------------------------------------------------------------
if __name__ == "__main__":
    # Small config consistent with the module's __init__.
    B = 4          # batch
    E = 32         # embedding dim
    H = 32         # LSTM hidden dim (encoder output_size); 4H = 128
    Tq = 8         # question length
    Td = 10        # description length
    VOCAB_Q = 48   # config['input_size']
    VOCAB_D = 56   # config['desc_vocab_size']
    OUT = 8        # config['output_size']

    key = jax.random.PRNGKey(0)
    ks = jax.random.split(key, 12)
    scale = 1.0 / jnp.sqrt(jnp.float32(H))

    def u(k, shape):
        return jax.random.uniform(k, shape, jnp.float32, -scale, scale)

    params = {
        "q_embedding": u(ks[0], (VOCAB_Q, E)),
        "d_embedding": u(ks[1], (VOCAB_D, E)),
        # LSTM weights, stored pre-transposed: (E, 4H), (H, 4H); bias = b_ih+b_hh
        # gate order [i, f, g, o] (PyTorch convention).
        "q_w_ih_t": u(ks[2], (E, 4 * H)),
        "q_w_hh_t": u(ks[3], (H, 4 * H)),
        "q_b":      u(ks[4], (1, 4 * H)),
        "d_w_ih_t": u(ks[5], (E, 4 * H)),
        "d_w_hh_t": u(ks[6], (H, 4 * H)),
        "d_b":      u(ks[7], (1, 4 * H)),
        # nn.Linear(2H, OUT): stored transposed (2H, OUT)
        "lin_w_t":  u(ks[8], (2 * H, OUT)),
        "lin_b":    u(ks[9], (OUT,)),
    }

    questions = jax.random.randint(ks[10], (B, Tq), 0, VOCAB_Q, jnp.int32)
    descriptions = jax.random.randint(ks[11], (B, Td), 0, VOCAB_D, jnp.int32)
    questions_l = jnp.array([Tq, Tq - 2, 3, Tq - 1], dtype=jnp.int32)
    descriptions_l = jnp.array([Td, 4, Td - 3, Td - 1], dtype=jnp.int32)

    prep = prepare_params(params)
    answers = description_baseline_forward(prep, questions, questions_l,
                                           descriptions, descriptions_l,
                                           out_dim=OUT)
    answers = jax.block_until_ready(answers)

    ref = _forward_ref(params, questions, questions_l,
                       descriptions, descriptions_l)
    assert answers.shape == (B, OUT)
    # bf16 MXU operands (h carry cast, W_hh, linear) vs. f32 reference.
    assert jnp.allclose(answers, ref, atol=2e-2, rtol=2e-2)

    print("KERNEL_OK")
</pallas_src>

<mosaic_0001>
module attributes {stable_mosaic.version = 11 : i64} {
  func.func @_fused_kernel(%arg0: memref<80x256xf32, #tpu.memory_space<vmem>>, %arg1: memref<8x64xi32, #tpu.memory_space<vmem>>, %arg2: memref<64x256xbf16, #tpu.memory_space<vmem>>, %arg3: memref<64x128xbf16, #tpu.memory_space<vmem>>, %arg4: memref<1x128xf32, #tpu.memory_space<vmem>>, %arg5: memref<8x128xf32, #tpu.memory_space<vmem>>) attributes {dimension_semantics = [], scalar_prefetch = 0 : i64, scratch_operands = 0 : i64, tpu.core_type = #tpu.core_type<tc>} {
    %c0 = arith.constant 0 : index
    %c0_0 = arith.constant 0 : index
    %0 = vector.load %arg1[%c0, %c0_0] : memref<8x64xi32, #tpu.memory_space<vmem>>, vector<8x64xi32>
    %c0_1 = arith.constant 0 : index
    %c0_2 = arith.constant 0 : index
    %1 = vector.load %arg2[%c0_1, %c0_2] : memref<64x256xbf16, #tpu.memory_space<vmem>>, vector<64x256xbf16>
    %cst = arith.constant 0.000000e+00 : f32
    %2 = vector.broadcast %cst : f32 to vector<8x64xf32>
    %cst_3 = arith.constant 0.000000e+00 : f32
    %3 = vector.broadcast %cst_3 : f32 to vector<8x64xf32>
    %c0_4 = arith.constant 0 : index
    %c0_5 = arith.constant 0 : index
    %4 = vector.load %arg0[%c0_4, %c0_5] : memref<80x256xf32, #tpu.memory_space<vmem>>, vector<8x256xf32>
    %5 = arith.truncf %2 : vector<8x64xf32> to vector<8x64xbf16>
    %cst_6 = arith.constant dense<0.000000e+00> : vector<8x256xf32>
    %6 = tpu.matmul %5, %1, %cst_6 {dimension_numbers = #tpu.dot_dimension_numbers<[1], [0], [0], [1], [0, 0, 1, 1], [], []>} : vector<8x64xbf16>, vector<64x256xbf16>, vector<8x256xf32> -> vector<8x256xf32>
    %7 = arith.addf %4, %6 : vector<8x256xf32>
    %8 = arith.negf %7 : vector<8x256xf32>
    %9 = math.exp %8 : vector<8x256xf32>
    %cst_7 = arith.constant 1.000000e+00 : f32
    %10 = vector.broadcast %cst_7 : f32 to vector<8x256xf32>
    %11 = arith.addf %10, %9 : vector<8x256xf32>
    %12 = arith.divf %10, %11 : vector<8x256xf32>
    %13 = vector.extract_strided_slice %12 {offsets = [0, 0], sizes = [8, 64], strides = [1, 1]} : vector<8x256xf32> to vector<8x64xf32>
    %14 = vector.extract_strided_slice %12 {offsets = [0, 64], sizes = [8, 64], strides = [1, 1]} : vector<8x256xf32> to vector<8x64xf32>
    %15 = vector.extract_strided_slice %12 {offsets = [0, 128], sizes = [8, 64], strides = [1, 1]} : vector<8x256xf32> to vector<8x64xf32>
    %cst_8 = arith.constant 2.000000e+00 : f32
    %16 = vector.broadcast %cst_8 : f32 to vector<8x64xf32>
    %17 = arith.mulf %16, %15 : vector<8x64xf32>
    %cst_9 = arith.constant 1.000000e+00 : f32
    %18 = vector.broadcast %cst_9 : f32 to vector<8x64xf32>
    %19 = arith.subf %17, %18 : vector<8x64xf32>
    %20 = vector.extract_strided_slice %12 {offsets = [0, 192], sizes = [8, 64], strides = [1, 1]} : vector<8x256xf32> to vector<8x64xf32>
    %21 = arith.mulf %14, %3 : vector<8x64xf32>
    %22 = arith.mulf %13, %19 : vector<8x64xf32>
    %23 = arith.addf %21, %22 : vector<8x64xf32>
    %24 = math.tanh %23 : vector<8x64xf32>
    %25 = arith.mulf %20, %24 : vector<8x64xf32>
    %c0_i32 = arith.constant 0 : i32
    %26 = vector.broadcast %c0_i32 : i32 to vector<8x64xi32>
    %27 = arith.cmpi sgt, %0, %26 : vector<8x64xi32>
    %28 = arith.select %27, %23, %3 : vector<8x64xi1>, vector<8x64xf32>
    %29 = arith.select %27, %25, %2 : vector<8x64xi1>, vector<8x64xf32>
    %c8 = arith.constant 8 : index
    %c0_10 = arith.constant 0 : index
    %30 = vector.load %arg0[%c8, %c0_10] : memref<80x256xf32, #tpu.memory_space<vmem>>, vector<8x256xf32>
    %31 = arith.truncf %29 : vector<8x64xf32> to vector<8x64xbf16>
    %cst_11 = arith.constant dense<0.000000e+00> : vector<8x256xf32>
    %32 = tpu.matmul %31, %1, %cst_11 {dimension_numbers = #tpu.dot_dimension_numbers<[1], [0], [0], [1], [0, 0, 1, 1], [], []>} : vector<8x64xbf16>, vector<64x256xbf16>, vector<8x256xf32> -> vector<8x256xf32>
    %33 = arith.addf %30, %32 : vector<8x256xf32>
    %34 = arith.negf %33 : vector<8x256xf32>
    %35 = math.exp %34 : vector<8x256xf32>
    %cst_12 = arith.constant 1.000000e+00 : f32
    %36 = vector.broadcast %cst_12 : f32 to vector<8x256xf32>
    %37 = arith.addf %36, %35 : vector<8x256xf32>
    %38 = arith.divf %36, %37 : vector<8x256xf32>
    %39 = vector.extract_strided_slice %38 {offsets = [0, 0], sizes = [8, 64], strides = [1, 1]} : vector<8x256xf32> to vector<8x64xf32>
    %40 = vector.extract_strided_slice %38 {offsets = [0, 64], sizes = [8, 64], strides = [1, 1]} : vector<8x256xf32> to vector<8x64xf32>
    %41 = vector.extract_strided_slice %38 {offsets = [0, 128], sizes = [8, 64], strides = [1, 1]} : vector<8x256xf32> to vector<8x64xf32>
    %cst_13 = arith.constant 2.000000e+00 : f32
    %42 = vector.broadcast %cst_13 : f32 to vector<8x64xf32>
    %43 = arith.mulf %42, %41 : vector<8x64xf32>
    %cst_14 = arith.constant 1.000000e+00 : f32
    %44 = vector.broadcast %cst_14 : f32 to vector<8x64xf32>
    %45 = arith.subf %43, %44 : vector<8x64xf32>
    %46 = vector.extract_strided_slice %38 {offsets = [0, 192], sizes = [8, 64], strides = [1, 1]} : vector<8x256xf32> to vector<8x64xf32>
    %47 = arith.mulf %40, %28 : vector<8x64xf32>
    %48 = arith.mulf %39, %45 : vector<8x64xf32>
    %49 = arith.addf %47, %48 : vector<8x64xf32>
    %50 = math.tanh %49 : vector<8x64xf32>
    %51 = arith.mulf %46, %50 : vector<8x64xf32>
    %c1_i32 = arith.constant 1 : i32
    %52 = vector.broadcast %c1_i32 : i32 to vector<8x64xi32>
    %53 = arith.cmpi sgt, %0, %52 : vector<8x64xi32>
    %54 = arith.select %53, %49, %28 : vector<8x64xi1>, vector<8x64xf32>
    %55 = arith.select %53, %51, %29 : vector<8x64xi1>, vector<8x64xf32>
    %c16 = arith.constant 16 : index
    %c0_15 = arith.constant 0 : index
    %56 = vector.load %arg0[%c16, %c0_15] : memref<80x256xf32, #tpu.memory_space<vmem>>, vector<8x256xf32>
    %57 = arith.truncf %55 : vector<8x64xf32> to vector<8x64xbf16>
    %cst_16 = arith.constant dense<0.000000e+00> : vector<8x256xf32>
    %58 = tpu.matmul %57, %1, %cst_16 {dimension_numbers = #tpu.dot_dimension_numbers<[1], [0], [0], [1], [0, 0, 1, 1], [], []>} : vector<8x64xbf16>, vector<64x256xbf16>, vector<8x256xf32> -> vector<8x256xf32>
    %59 = arith.addf %56, %58 : vector<8x256xf32>
    %60 = arith.negf %59 : vector<8x256xf32>
    %61 = math.exp %60 : vector<8x256xf32>
    %cst_17 = arith.constant 1.000000e+00 : f32
    %62 = vector.broadcast %cst_17 : f32 to vector<8x256xf32>
    %63 = arith.addf %62, %61 : vector<8x256xf32>
    %64 = arith.divf %62, %63 : vector<8x256xf32>
    %65 = vector.extract_strided_slice %64 {offsets = [0, 0], sizes = [8, 64], strides = [1, 1]} : vector<8x256xf32> to vector<8x64xf32>
    %66 = vector.extract_strided_slice %64 {offsets = [0, 64], sizes = [8, 64], strides = [1, 1]} : vector<8x256xf32> to vector<8x64xf32>
    %67 = vector.extract_strided_slice %64 {offsets = [0, 128], sizes = [8, 64], strides = [1, 1]} : vector<8x256xf32> to vector<8x64xf32>
    %cst_18 = arith.constant 2.000000e+00 : f32
    %68 = vector.broadcast %cst_18 : f32 to vector<8x64xf32>
    %69 = arith.mulf %68, %67 : vector<8x64xf32>
    %cst_19 = arith.constant 1.000000e+00 : f32
    %70 = vector.broadcast %cst_19 : f32 to vector<8x64xf32>
    %71 = arith.subf %69, %70 : vector<8x64xf32>
    %72 = vector.extract_strided_slice %64 {offsets = [0, 192], sizes = [8, 64], strides = [1, 1]} : vector<8x256xf32> to vector<8x64xf32>
    %73 = arith.mulf %66, %54 : vector<8x64xf32>
    %74 = arith.mulf %65, %71 : vector<8x64xf32>
    %75 = arith.addf %73, %74 : vector<8x64xf32>
    %76 = math.tanh %75 : vector<8x64xf32>
    %77 = arith.mulf %72, %76 : vector<8x64xf32>
    %c2_i32 = arith.constant 2 : i32
    %78 = vector.broadcast %c2_i32 : i32 to vector<8x64xi32>
    %79 = arith.cmpi sgt, %0, %78 : vector<8x64xi32>
    %80 = arith.select %79, %75, %54 : vector<8x64xi1>, vector<8x64xf32>
    %81 = arith.select %79, %77, %55 : vector<8x64xi1>, vector<8x64xf32>
    %c24 = arith.constant 24 : index
    %c0_20 = arith.constant 0 : index
    %82 = vector.load %arg0[%c24, %c0_20] : memref<80x256xf32, #tpu.memory_space<vmem>>, vector<8x256xf32>
    %83 = arith.truncf %81 : vector<8x64xf32> to vector<8x64xbf16>
    %cst_21 = arith.constant dense<0.000000e+00> : vector<8x256xf32>
    %84 = tpu.matmul %83, %1, %cst_21 {dimension_numbers = #tpu.dot_dimension_numbers<[1], [0], [0], [1], [0, 0, 1, 1], [], []>} : vector<8x64xbf16>, vector<64x256xbf16>, vector<8x256xf32> -> vector<8x256xf32>
    %85 = arith.addf %82, %84 : vector<8x256xf32>
    %86 = arith.negf %85 : vector<8x256xf32>
    %87 = math.exp %86 : vector<8x256xf32>
    %cst_22 = arith.constant 1.000000e+00 : f32
    %88 = vector.broadcast %cst_22 : f32 to vector<8x256xf32>
    %89 = arith.addf %88, %87 : vector<8x256xf32>
    %90 = arith.divf %88, %89 : vector<8x256xf32>
    %91 = vector.extract_strided_slice %90 {offsets = [0, 0], sizes = [8, 64], strides = [1, 1]} : vector<8x256xf32> to vector<8x64xf32>
    %92 = vector.extract_strided_slice %90 {offsets = [0, 64], sizes = [8, 64], strides = [1, 1]} : vector<8x256xf32> to vector<8x64xf32>
    %93 = vector.extract_strided_slice %90 {offsets = [0, 128], sizes = [8, 64], strides = [1, 1]} : vector<8x256xf32> to vector<8x64xf32>
    %cst_23 = arith.constant 2.000000e+00 : f32
    %94 = vector.broadcast %cst_23 : f32 to vector<8x64xf32>
    %95 = arith.mulf %94, %93 : vector<8x64xf32>
    %cst_24 = arith.constant 1.000000e+00 : f32
    %96 = vector.broadcast %cst_24 : f32 to vector<8x64xf32>
    %97 = arith.subf %95, %96 : vector<8x64xf32>
    %98 = vector.extract_strided_slice %90 {offsets = [0, 192], sizes = [8, 64], strides = [1, 1]} : vector<8x256xf32> to vector<8x64xf32>
    %99 = arith.mulf %92, %80 : vector<8x64xf32>
    %100 = arith.mulf %91, %97 : vector<8x64xf32>
    %101 = arith.addf %99, %100 : vector<8x64xf32>
    %102 = math.tanh %101 : vector<8x64xf32>
    %103 = arith.mulf %98, %102 : vector<8x64xf32>
    %c3_i32 = arith.constant 3 : i32
    %104 = vector.broadcast %c3_i32 : i32 to vector<8x64xi32>
    %105 = arith.cmpi sgt, %0, %104 : vector<8x64xi32>
    %106 = arith.select %105, %101, %80 : vector<8x64xi1>, vector<8x64xf32>
    %107 = arith.select %105, %103, %81 : vector<8x64xi1>, vector<8x64xf32>
    %c32 = arith.constant 32 : index
    %c0_25 = arith.constant 0 : index
    %108 = vector.load %arg0[%c32, %c0_25] : memref<80x256xf32, #tpu.memory_space<vmem>>, vector<8x256xf32>
    %109 = arith.truncf %107 : vector<8x64xf32> to vector<8x64xbf16>
    %cst_26 = arith.constant dense<0.000000e+00> : vector<8x256xf32>
    %110 = tpu.matmul %109, %1, %cst_26 {dimension_numbers = #tpu.dot_dimension_numbers<[1], [0], [0], [1], [0, 0, 1, 1], [], []>} : vector<8x64xbf16>, vector<64x256xbf16>, vector<8x256xf32> -> vector<8x256xf32>
    %111 = arith.addf %108, %110 : vector<8x256xf32>
    %112 = arith.negf %111 : vector<8x256xf32>
    %113 = math.exp %112 : vector<8x256xf32>
    %cst_27 = arith.constant 1.000000e+00 : f32
    %114 = vector.broadcast %cst_27 : f32 to vector<8x256xf32>
    %115 = arith.addf %114, %113 : vector<8x256xf32>
    %116 = arith.divf %114, %115 : vector<8x256xf32>
    %117 = vector.extract_strided_slice %116 {offsets = [0, 0], sizes = [8, 64], strides = [1, 1]} : vector<8x256xf32> to vector<8x64xf32>
    %118 = vector.extract_strided_slice %116 {offsets = [0, 64], sizes = [8, 64], strides = [1, 1]} : vector<8x256xf32> to vector<8x64xf32>
    %119 = vector.extract_strided_slice %116 {offsets = [0, 128], sizes = [8, 64], strides = [1, 1]} : vector<8x256xf32> to vector<8x64xf32>
    %cst_28 = arith.constant 2.000000e+00 : f32
    %120 = vector.broadcast %cst_28 : f32 to vector<8x64xf32>
    %121 = arith.mulf %120, %119 : vector<8x64xf32>
    %cst_29 = arith.constant 1.000000e+00 : f32
    %122 = vector.broadcast %cst_29 : f32 to vector<8x64xf32>
    %123 = arith.subf %121, %122 : vector<8x64xf32>
    %124 = vector.extract_strided_slice %116 {offsets = [0, 192], sizes = [8, 64], strides = [1, 1]} : vector<8x256xf32> to vector<8x64xf32>
    %125 = arith.mulf %118, %106 : vector<8x64xf32>
    %126 = arith.mulf %117, %123 : vector<8x64xf32>
    %127 = arith.addf %125, %126 : vector<8x64xf32>
    %128 = math.tanh %127 : vector<8x64xf32>
    %129 = arith.mulf %124, %128 : vector<8x64xf32>
    %c4_i32 = arith.constant 4 : i32
    %130 = vector.broadcast %c4_i32 : i32 to vector<8x64xi32>
    %131 = arith.cmpi sgt, %0, %130 : vector<8x64xi32>
    %132 = arith.select %131, %127, %106 : vector<8x64xi1>, vector<8x64xf32>
    %133 = arith.select %131, %129, %107 : vector<8x64xi1>, vector<8x64xf32>
    %c40 = arith.constant 40 : index
    %c0_30 = arith.constant 0 : index
    %134 = vector.load %arg0[%c40, %c0_30] : memref<80x256xf32, #tpu.memory_space<vmem>>, vector<8x256xf32>
    %135 = arith.truncf %133 : vector<8x64xf32> to vector<8x64xbf16>
    %cst_31 = arith.constant dense<0.000000e+00> : vector<8x256xf32>
    %136 = tpu.matmul %135, %1, %cst_31 {dimension_numbers = #tpu.dot_dimension_numbers<[1], [0], [0], [1], [0, 0, 1, 1], [], []>} : vector<8x64xbf16>, vector<64x256xbf16>, vector<8x256xf32> -> vector<8x256xf32>
    %137 = arith.addf %134, %136 : vector<8x256xf32>
    %138 = arith.negf %137 : vector<8x256xf32>
    %139 = math.exp %138 : vector<8x256xf32>
    %cst_32 = arith.constant 1.000000e+00 : f32
    %140 = vector.broadcast %cst_32 : f32 to vector<8x256xf32>
    %141 = arith.addf %140, %139 : vector<8x256xf32>
    %142 = arith.divf %140, %141 : vector<8x256xf32>
    %143 = vector.extract_strided_slice %142 {offsets = [0, 0], sizes = [8, 64], strides = [1, 1]} : vector<8x256xf32> to vector<8x64xf32>
    %144 = vector.extract_strided_slice %142 {offsets = [0, 64], sizes = [8, 64], strides = [1, 1]} : vector<8x256xf32> to vector<8x64xf32>
    %145 = vector.extract_strided_slice %142 {offsets = [0, 128], sizes = [8, 64], strides = [1, 1]} : vector<8x256xf32> to vector<8x64xf32>
    %cst_33 = arith.constant 2.000000e+00 : f32
    %146 = vector.broadcast %cst_33 : f32 to vector<8x64xf32>
    %147 = arith.mulf %146, %145 : vector<8x64xf32>
    %cst_34 = arith.constant 1.000000e+00 : f32
    %148 = vector.broadcast %cst_34 : f32 to vector<8x64xf32>
    %149 = arith.subf %147, %148 : vector<8x64xf32>
    %150 = vector.extract_strided_slice %142 {offsets = [0, 192], sizes = [8, 64], strides = [1, 1]} : vector<8x256xf32> to vector<8x64xf32>
    %151 = arith.mulf %144, %132 : vector<8x64xf32>
    %152 = arith.mulf %143, %149 : vector<8x64xf32>
    %153 = arith.addf %151, %152 : vector<8x64xf32>
    %154 = math.tanh %153 : vector<8x64xf32>
    %155 = arith.mulf %150, %154 : vector<8x64xf32>
    %c5_i32 = arith.constant 5 : i32
    %156 = vector.broadcast %c5_i32 : i32 to vector<8x64xi32>
    %157 = arith.cmpi sgt, %0, %156 : vector<8x64xi32>
    %158 = arith.select %157, %153, %132 : vector<8x64xi1>, vector<8x64xf32>
    %159 = arith.select %157, %155, %133 : vector<8x64xi1>, vector<8x64xf32>
    %c48 = arith.constant 48 : index
    %c0_35 = arith.constant 0 : index
    %160 = vector.load %arg0[%c48, %c0_35] : memref<80x256xf32, #tpu.memory_space<vmem>>, vector<8x256xf32>
    %161 = arith.truncf %159 : vector<8x64xf32> to vector<8x64xbf16>
    %cst_36 = arith.constant dense<0.000000e+00> : vector<8x256xf32>
    %162 = tpu.matmul %161, %1, %cst_36 {dimension_numbers = #tpu.dot_dimension_numbers<[1], [0], [0], [1], [0, 0, 1, 1], [], []>} : vector<8x64xbf16>, vector<64x256xbf16>, vector<8x256xf32> -> vector<8x256xf32>
    %163 = arith.addf %160, %162 : vector<8x256xf32>
    %164 = arith.negf %163 : vector<8x256xf32>
    %165 = math.exp %164 : vector<8x256xf32>
    %cst_37 = arith.constant 1.000000e+00 : f32
    %166 = vector.broadcast %cst_37 : f32 to vector<8x256xf32>
    %167 = arith.addf %166, %165 : vector<8x256xf32>
    %168 = arith.divf %166, %167 : vector<8x256xf32>
    %169 = vector.extract_strided_slice %168 {offsets = [0, 0], sizes = [8, 64], strides = [1, 1]} : vector<8x256xf32> to vector<8x64xf32>
    %170 = vector.extract_strided_slice %168 {offsets = [0, 64], sizes = [8, 64], strides = [1, 1]} : vector<8x256xf32> to vector<8x64xf32>
    %171 = vector.extract_strided_slice %168 {offsets = [0, 128], sizes = [8, 64], strides = [1, 1]} : vector<8x256xf32> to vector<8x64xf32>
    %cst_38 = arith.constant 2.000000e+00 : f32
    %172 = vector.broadcast %cst_38 : f32 to vector<8x64xf32>
    %173 = arith.mulf %172, %171 : vector<8x64xf32>
    %cst_39 = arith.constant 1.000000e+00 : f32
    %174 = vector.broadcast %cst_39 : f32 to vector<8x64xf32>
    %175 = arith.subf %173, %174 : vector<8x64xf32>
    %176 = vector.extract_strided_slice %168 {offsets = [0, 192], sizes = [8, 64], strides = [1, 1]} : vector<8x256xf32> to vector<8x64xf32>
    %177 = arith.mulf %170, %158 : vector<8x64xf32>
    %178 = arith.mulf %169, %175 : vector<8x64xf32>
    %179 = arith.addf %177, %178 : vector<8x64xf32>
    %180 = math.tanh %179 : vector<8x64xf32>
    %181 = arith.mulf %176, %180 : vector<8x64xf32>
    %c6_i32 = arith.constant 6 : i32
    %182 = vector.broadcast %c6_i32 : i32 to vector<8x64xi32>
    %183 = arith.cmpi sgt, %0, %182 : vector<8x64xi32>
    %184 = arith.select %183, %179, %158 : vector<8x64xi1>, vector<8x64xf32>
    %185 = arith.select %183, %181, %159 : vector<8x64xi1>, vector<8x64xf32>
    %c56 = arith.constant 56 : index
    %c0_40 = arith.constant 0 : index
    %186 = vector.load %arg0[%c56, %c0_40] : memref<80x256xf32, #tpu.memory_space<vmem>>, vector<8x256xf32>
    %187 = arith.truncf %185 : vector<8x64xf32> to vector<8x64xbf16>
    %cst_41 = arith.constant dense<0.000000e+00> : vector<8x256xf32>
    %188 = tpu.matmul %187, %1, %cst_41 {dimension_numbers = #tpu.dot_dimension_numbers<[1], [0], [0], [1], [0, 0, 1, 1], [], []>} : vector<8x64xbf16>, vector<64x256xbf16>, vector<8x256xf32> -> vector<8x256xf32>
    %189 = arith.addf %186, %188 : vector<8x256xf32>
    %190 = arith.negf %189 : vector<8x256xf32>
    %191 = math.exp %190 : vector<8x256xf32>
    %cst_42 = arith.constant 1.000000e+00 : f32
    %192 = vector.broadcast %cst_42 : f32 to vector<8x256xf32>
    %193 = arith.addf %192, %191 : vector<8x256xf32>
    %194 = arith.divf %192, %193 : vector<8x256xf32>
    %195 = vector.extract_strided_slice %194 {offsets = [0, 0], sizes = [8, 64], strides = [1, 1]} : vector<8x256xf32> to vector<8x64xf32>
    %196 = vector.extract_strided_slice %194 {offsets = [0, 64], sizes = [8, 64], strides = [1, 1]} : vector<8x256xf32> to vector<8x64xf32>
    %197 = vector.extract_strided_slice %194 {offsets = [0, 128], sizes = [8, 64], strides = [1, 1]} : vector<8x256xf32> to vector<8x64xf32>
    %cst_43 = arith.constant 2.000000e+00 : f32
    %198 = vector.broadcast %cst_43 : f32 to vector<8x64xf32>
    %199 = arith.mulf %198, %197 : vector<8x64xf32>
    %cst_44 = arith.constant 1.000000e+00 : f32
    %200 = vector.broadcast %cst_44 : f32 to vector<8x64xf32>
    %201 = arith.subf %199, %200 : vector<8x64xf32>
    %202 = vector.extract_strided_slice %194 {offsets = [0, 192], sizes = [8, 64], strides = [1, 1]} : vector<8x256xf32> to vector<8x64xf32>
    %203 = arith.mulf %196, %184 : vector<8x64xf32>
    %204 = arith.mulf %195, %201 : vector<8x64xf32>
    %205 = arith.addf %203, %204 : vector<8x64xf32>
    %206 = math.tanh %205 : vector<8x64xf32>
    %207 = arith.mulf %202, %206 : vector<8x64xf32>
    %c7_i32 = arith.constant 7 : i32
    %208 = vector.broadcast %c7_i32 : i32 to vector<8x64xi32>
    %209 = arith.cmpi sgt, %0, %208 : vector<8x64xi32>
    %210 = arith.select %209, %205, %184 : vector<8x64xi1>, vector<8x64xf32>
    %211 = arith.select %209, %207, %185 : vector<8x64xi1>, vector<8x64xf32>
    %c64 = arith.constant 64 : index
    %c0_45 = arith.constant 0 : index
    %212 = vector.load %arg0[%c64, %c0_45] : memref<80x256xf32, #tpu.memory_space<vmem>>, vector<8x256xf32>
    %213 = arith.truncf %211 : vector<8x64xf32> to vector<8x64xbf16>
    %cst_46 = arith.constant dense<0.000000e+00> : vector<8x256xf32>
    %214 = tpu.matmul %213, %1, %cst_46 {dimension_numbers = #tpu.dot_dimension_numbers<[1], [0], [0], [1], [0, 0, 1, 1], [], []>} : vector<8x64xbf16>, vector<64x256xbf16>, vector<8x256xf32> -> vector<8x256xf32>
    %215 = arith.addf %212, %214 : vector<8x256xf32>
    %216 = arith.negf %215 : vector<8x256xf32>
    %217 = math.exp %216 : vector<8x256xf32>
    %cst_47 = arith.constant 1.000000e+00 : f32
    %218 = vector.broadcast %cst_47 : f32 to vector<8x256xf32>
    %219 = arith.addf %218, %217 : vector<8x256xf32>
    %220 = arith.divf %218, %219 : vector<8x256xf32>
    %221 = vector.extract_strided_slice %220 {offsets = [0, 0], sizes = [8, 64], strides = [1, 1]} : vector<8x256xf32> to vector<8x64xf32>
    %222 = vector.extract_strided_slice %220 {offsets = [0, 64], sizes = [8, 64], strides = [1, 1]} : vector<8x256xf32> to vector<8x64xf32>
    %223 = vector.extract_strided_slice %220 {offsets = [0, 128], sizes = [8, 64], strides = [1, 1]} : vector<8x256xf32> to vector<8x64xf32>
    %cst_48 = arith.constant 2.000000e+00 : f32
    %224 = vector.broadcast %cst_48 : f32 to vector<8x64xf32>
    %225 = arith.mulf %224, %223 : vector<8x64xf32>
    %cst_49 = arith.constant 1.000000e+00 : f32
    %226 = vector.broadcast %cst_49 : f32 to vector<8x64xf32>
    %227 = arith.subf %225, %226 : vector<8x64xf32>
    %228 = vector.extract_strided_slice %220 {offsets = [0, 192], sizes = [8, 64], strides = [1, 1]} : vector<8x256xf32> to vector<8x64xf32>
    %229 = arith.mulf %222, %210 : vector<8x64xf32>
    %230 = arith.mulf %221, %227 : vector<8x64xf32>
    %231 = arith.addf %229, %230 : vector<8x64xf32>
    %232 = math.tanh %231 : vector<8x64xf32>
    %233 = arith.mulf %228, %232 : vector<8x64xf32>
    %c8_i32 = arith.constant 8 : i32
    %234 = vector.broadcast %c8_i32 : i32 to vector<8x64xi32>
    %235 = arith.cmpi sgt, %0, %234 : vector<8x64xi32>
    %236 = arith.select %235, %231, %210 : vector<8x64xi1>, vector<8x64xf32>
    %237 = arith.select %235, %233, %211 : vector<8x64xi1>, vector<8x64xf32>
    %c72 = arith.constant 72 : index
    %c0_50 = arith.constant 0 : index
    %238 = vector.load %arg0[%c72, %c0_50] : memref<80x256xf32, #tpu.memory_space<vmem>>, vector<8x256xf32>
    %239 = arith.truncf %237 : vector<8x64xf32> to vector<8x64xbf16>
    %cst_51 = arith.constant dense<0.000000e+00> : vector<8x256xf32>
    %240 = tpu.matmul %239, %1, %cst_51 {dimension_numbers = #tpu.dot_dimension_numbers<[1], [0], [0], [1], [0, 0, 1, 1], [], []>} : vector<8x64xbf16>, vector<64x256xbf16>, vector<8x256xf32> -> vector<8x256xf32>
    %241 = arith.addf %238, %240 : vector<8x256xf32>
    %242 = arith.negf %241 : vector<8x256xf32>
    %243 = math.exp %242 : vector<8x256xf32>
    %cst_52 = arith.constant 1.000000e+00 : f32
    %244 = vector.broadcast %cst_52 : f32 to vector<8x256xf32>
    %245 = arith.addf %244, %243 : vector<8x256xf32>
    %246 = arith.divf %244, %245 : vector<8x256xf32>
    %247 = vector.extract_strided_slice %246 {offsets = [0, 0], sizes = [8, 64], strides = [1, 1]} : vector<8x256xf32> to vector<8x64xf32>
    %248 = vector.extract_strided_slice %246 {offsets = [0, 64], sizes = [8, 64], strides = [1, 1]} : vector<8x256xf32> to vector<8x64xf32>
    %249 = vector.extract_strided_slice %246 {offsets = [0, 128], sizes = [8, 64], strides = [1, 1]} : vector<8x256xf32> to vector<8x64xf32>
    %cst_53 = arith.constant 2.000000e+00 : f32
    %250 = vector.broadcast %cst_53 : f32 to vector<8x64xf32>
    %251 = arith.mulf %250, %249 : vector<8x64xf32>
    %cst_54 = arith.constant 1.000000e+00 : f32
    %252 = vector.broadcast %cst_54 : f32 to vector<8x64xf32>
    %253 = arith.subf %251, %252 : vector<8x64xf32>
    %254 = vector.extract_strided_slice %246 {offsets = [0, 192], sizes = [8, 64], strides = [1, 1]} : vector<8x256xf32> to vector<8x64xf32>
    %255 = arith.mulf %248, %236 : vector<8x64xf32>
    %256 = arith.mulf %247, %253 : vector<8x64xf32>
    %257 = arith.addf %255, %256 : vector<8x64xf32>
    %258 = math.tanh %257 : vector<8x64xf32>
    %259 = arith.mulf %254, %258 : vector<8x64xf32>
    %c9_i32 = arith.constant 9 : i32
    %260 = vector.broadcast %c9_i32 : i32 to vector<8x64xi32>
    %261 = arith.cmpi sgt, %0, %260 : vector<8x64xi32>
    %262 = arith.select %261, %259, %237 : vector<8x64xi1>, vector<8x64xf32>
    %263 = arith.truncf %262 : vector<8x64xf32> to vector<8x64xbf16>
    %c0_55 = arith.constant 0 : index
    %c0_56 = arith.constant 0 : index
    %264 = vector.load %arg3[%c0_55, %c0_56] : memref<64x128xbf16, #tpu.memory_space<vmem>>, vector<64x128xbf16>
    %cst_57 = arith.constant dense<0.000000e+00> : vector<8x128xf32>
    %265 = tpu.matmul %263, %264, %cst_57 {dimension_numbers = #tpu.dot_dimension_numbers<[1], [0], [0], [1], [0, 0, 1, 1], [], []>} : vector<8x64xbf16>, vector<64x128xbf16>, vector<8x128xf32> -> vector<8x128xf32>
    %c0_58 = arith.constant 0 : index
    %c0_59 = arith.constant 0 : index
    %266 = vector.load %arg4[%c0_58, %c0_59] : memref<1x128xf32, #tpu.memory_space<vmem>>, vector<1x128xf32>
    %267 = vector.broadcast %266 : vector<1x128xf32> to vector<8x128xf32>
    %268 = arith.addf %265, %267 : vector<8x128xf32>
    %c0_60 = arith.constant 0 : index
    %c0_61 = arith.constant 0 : index
    %269 = vector.load %arg5[%c0_60, %c0_61] : memref<8x128xf32, #tpu.memory_space<vmem>>, vector<8x128xf32>
    tpu.vector_store %arg5[%c0_60, %c0_61], %268 {strides = array<i32>} : memref<8x128xf32, #tpu.memory_space<vmem>>, vector<8x128xf32>,
    return
  }
}

</mosaic_0001>

<bundles_post_ra>
// kernel: description_baseline_forward.1
= control target key start
LH: loop header
LB: loop body
LE: loop exit
PB: predicated region body
PF: predicated region fallthrough
CT: control target
= control target key end

     0   :  { %v1209_v1 = vmov 0   ;;  %s1210_s12 = smov 64   ;;  %vm72_vm1 = vcmask 523264   ;;  %vm1212_vm10 = vmmov 0   ;;  %s1515_s2 = inlined_call_operand.vmem [shape: bf16[64,256], index: 2, kind: input, shape index: {}]   ;;  %s1516_s0 = inlined_call_operand.vmem [shape: f32[80,256], index: 0, kind: input, shape index: {}]   ;;  %s1517_s1 = inlined_call_operand.vmem [shape: s32[8,64], index: 1, kind: input, shape index: {}]   ;;  %s1518_s3 = inlined_call_operand.vmem [shape: bf16[64,128], index: 3, kind: input, shape index: {}]   ;;  %s1519_s4 = inlined_call_operand.vmem [shape: f32[1,128], index: 4, kind: input, shape index: {}]   ;;  %s1520_s5 = inlined_call_operand.vmem [shape: f32[8,128], index: 5, kind: output, shape index: {}]  }
   0x1   :  { %v1246_v0 = vld [vmem:[%s1515_s2 + $0x4] ss:$8 sps:$4 sm:$0xff]   ;;  %108 = vmatprep.mubr.bf16.mxu0 %v1209_v1  ;;  %191 = vmatprep.mubr.bf16.mxu1 %v1209_v1  ;;  %v1253_v2 = vld [vmem:[%s1515_s2] ss:$8 sps:$4 sm:$0xff]   ;;  %v1259_v3 = vld [vmem:[%s1515_s2 + $0x14] ss:$8 sps:$4 sm:$0xff]  }
   0x2   :  { %76 = vmatprep.subr.bf16.mxu0 %v1246_v0  ;;  %159 = vmatprep.subr.bf16.mxu1 %v1246_v0  ;;  %v1266_v4 = vld [vmem:[%s1515_s2 + $0x10] ss:$8 sps:$4 sm:$0xff]   ;;  %v1273_v5 = vld [vmem:[%s1515_s2 + $0x24] ss:$8 sps:$4 sm:$0xff]   ;;  %v1280_v6 = vld [vmem:[%s1515_s2 + $0x20] ss:$8 sps:$4 sm:$0xff]  }
   0x3   :  { %77 = vmatpush1.bf16.msra.mxu0 %v1253_v2  ;;  %160 = vmatpush1.bf16.msra.mxu1 %v1253_v2  ;;  %v1287_v7 = vld [vmem:[%s1515_s2 + $0x34] ss:$8 sps:$4 sm:$0xff]   ;;  %v1294_v8 = vld [vmem:[%s1515_s2 + $0x30] ss:$8 sps:$4 sm:$0xff]   ;;  %v30_v9 = vld [vmem:[%s1516_s0] sm:$0xff] }
   0x4   :  { %78 = vmatprep.subr.bf16.mxu0 %v1259_v3  ;;  %161 = vmatprep.subr.bf16.mxu1 %v1259_v3  ;;  %v31_v10 = vld [vmem:[%s1516_s0 + $0x8] sm:$0xff]  ;;  %v1325_v33 = vld [vmem:[%s1517_s1] sm:$0xff]  ;;  %v153_v39 = vld [vmem:[%s1516_s0 + $0x10] sm:$0xff] }
   0x5   :  { %vm142_vm0 = vcmp.gt.s32.totalorder %v1325_v33, 0  ;;  %v154_v40 = vld [vmem:[%s1516_s0 + $0x18] sm:$0xff]  ;;  %vm229_vm2 = vcmp.gt.s32.totalorder %v1325_v33, 1  ;;  %vm316_vm3 = vcmp.gt.s32.totalorder %v1325_v33, 2  ;;  %vm403_vm4 = vcmp.gt.s32.totalorder %v1325_v33, 3 }
   0x6   :  { %vm490_vm5 = vcmp.gt.s32.totalorder %v1325_v33, 4  ;;  %vm577_vm6 = vcmp.gt.s32.totalorder %v1325_v33, 5  ;;  %vm664_vm7 = vcmp.gt.s32.totalorder %v1325_v33, 6  ;;  %vm751_vm8 = vcmp.gt.s32.totalorder %v1325_v33, 7 }
   0x7   :  { %79 = vmatpush1.bf16.msra.mxu0 %v1266_v4  ;;  %162 = vmatpush1.bf16.msra.mxu1 %v1266_v4  ;;  %vm838_vm9 = vcmp.gt.s32.totalorder %v1325_v33, 8  ;;  %vm925_vm11 = vcmp.gt.s32.totalorder %v1325_v33, 9 }
   0x8   :  { %80 = vmatprep.subr.bf16.mxu0 %v1273_v5  ;;  %163 = vmatprep.subr.bf16.mxu1 %v1273_v5 }
   0xb   :  { %81 = vmatpush1.bf16.msra.mxu0 %v1280_v6  ;;  %164 = vmatpush1.bf16.msra.mxu1 %v1280_v6 }
   0xc   :  { %82 = vmatprep.subr.bf16.mxu0 %v1287_v7  ;;  %165 = vmatprep.subr.bf16.mxu1 %v1287_v7 }
   0xf   :  { %83 = vmatpush1.bf16.msra.mxu0 %v1294_v8  ;;  %166 = vmatpush1.bf16.msra.mxu1 %v1294_v8 }
  0x10   :  { %246 = vmatprep.subr.bf16.mxu0 %v1246_v0  ;;  %333 = vmatprep.subr.bf16.mxu1 %v1246_v0 }
  0x12   :  { %109 = vmatmul.mubr.bf16.vlgmr.msra.gmra.mrb[0].mxu0 %v1209_v1 }
  0x13   :  { %247 = vmatpush1.bf16.msra.mxu0 %v1253_v2  ;;  %278 = vmatprep.mubr.bf16.mxu0 %v1209_v1 }
  0x14   :  { %248 = vmatprep.subr.bf16.mxu0 %v1259_v3 }
  0x17   :  { %249 = vmatpush1.bf16.msra.mxu0 %v1266_v4 }
  0x18   :  { %250 = vmatprep.subr.bf16.mxu0 %v1273_v5 }
  0x1b   :  { %251 = vmatpush1.bf16.msra.mxu0 %v1280_v6 }
  0x1c   :  { %252 = vmatprep.subr.bf16.mxu0 %v1287_v7 }
  0x1f   :  { %253 = vmatpush1.bf16.msra.mxu0 %v1294_v8 }
  0x20   :  { %420 = vmatprep.subr.bf16.mxu0 %v1246_v0 }
  0xe5   :  { %v110_v11 = vpop.f32.mrb[0].mxu0 }
  0xe6   :  { %v117_v12 = vadd.f32 %v110_v11, %v30_v9  ;;  %v112_v13 = vpop.f32.mrb[1].mxu0 }
  0xe7   :  { %v118_v14 = vadd.f32 %v112_v13, %v31_v10  ;;  %v114_v15 = vpop.f32.mrb[2].mxu0 }
  0xe8   :  { %v1027_v16 = vmul.f32 -1.442695, %v117_v12  ;;  %v115_v17 = vpop.f32.mrb[3].mxu0  ;;  %v241_v15 = vld [vmem:[%s1516_s0 + $0x28] sm:$0xff] }
  0xe9   :  { %v1028_v18 = vmul.f32 -1.442695, %v118_v14  ;;  %v240_v14 = vld [vmem:[%s1516_s0 + $0x20] sm:$0xff] }
  0xea   :  { %1109 = vpow2.f32 %v1027_v16 }
  0xeb   :  { %1111 = vpow2.f32 %v1028_v18 }
  0xf4   :  { %v1110_v19 = vpop.eup %1109 }
  0xf5   :  { %v1112_v20 = vpop.eup %1111  ;;  %v125_v22 = vadd.f32 1.0, %v1110_v19 }
  0xf6   :  { %v126_v21 = vadd.f32 1.0, %v1112_v20 }
  0xf8   :  { %1113 = vrcp.f32 %v126_v21 }
  0xf9   :  { %1115 = vrcp.f32 %v125_v22 }
 0x102   :  { %v1114_v23 = vpop.eup %1113 }
 0x103   :  { %v131_v24 = vmul.f32 2.0, %v1114_v23  ;;  %v1116_v26 = vpop.eup %1115 }
 0x104   :  { %v133_v28 = vmul.f32 0.0, %v1116_v26 }
 0x105   :  { %v1029_v25 = vadd.f32 -1.0, %v131_v24 }
 0x107   :  { %v134_v27 = vmul.f32 %v1116_v26, %v1029_v25 }
 0x109   :  { %136 = vrot.lane.b32.xlu0 %v134_v27, %s1210_s12 }
 0x17b   :  { %v137_v29 = vpop.permute.xlu0 %136 }
 0x17c   :  { %v139_v30 = vadd.f32 %v137_v29, %v133_v28 }
 0x17e   :  { %1117 = vtanh.f32 %v139_v30  ;;  %144 = vrot.lane.b32.xlu1 %v139_v30, %s1210_s12 }
 0x188   :  { %v1118_v31 = vpop.eup %1117 }
 0x189   :  { %v141_v32 = vmul.f32 %v1118_v31, %v1114_v23 }
 0x18b   :  { %149 = vrot.lane.b32.xlu0 %v141_v32, %s1210_s12 }
 0x1f0   :  { %v145_v34 = vpop.permute.xlu1 %144 }
 0x1f1   :  { %v147_v35 = vsel %vm142_vm0, %v145_v34, 0.0 }
 0x1f2   :  { %217 = vrot.lane.b32.xlu1 %v147_v35, %s1210_s12 }
 0x1fd   :  { %v150_v36 = vpop.permute.xlu0 %149 }
 0x1fe   :  { %v152_v37 = vsel %vm142_vm0, %v150_v36, 0.0 }
 0x1ff   :  { %v155_v38 = vpack.c.bf16 %v152_v37, %v152_v37 }
 0x201   :  { %1030 = vmatmul.mubr.msk.bf16.vlgmr.msra.gmra.mrb[0].mxu1 %vm72_vm1, %v155_v38 }
 0x202   :  { %334 = vmatpush1.bf16.msra.mxu1 %v1253_v2  ;;  %365 = vmatprep.mubr.bf16.mxu1 %v1209_v1 }
 0x203   :  { %335 = vmatprep.subr.bf16.mxu1 %v1259_v3 }
 0x206   :  { %336 = vmatpush1.bf16.msra.mxu1 %v1266_v4 }
 0x207   :  { %337 = vmatprep.subr.bf16.mxu1 %v1273_v5 }
 0x20a   :  { %338 = vmatpush1.bf16.msra.mxu1 %v1280_v6 }
 0x20b   :  { %339 = vmatprep.subr.bf16.mxu1 %v1287_v7 }
 0x20e   :  { %340 = vmatpush1.bf16.msra.mxu1 %v1294_v8 }
 0x20f   :  { %507 = vmatprep.subr.bf16.mxu1 %v1246_v0 }
 0x264   :  { %v218_v58 = vpop.permute.xlu1 %217 }
 0x2d4   :  { %v193_v41 = vpop.f32.mrb[0].mxu1 }
 0x2d5   :  { %v200_v42 = vadd.f32 %v193_v41, %v153_v39  ;;  %v195_v43 = vpop.f32.mrb[1].mxu1 }
 0x2d6   :  { %v201_v44 = vadd.f32 %v195_v43, %v154_v40  ;;  %v197_v45 = vpop.f32.mrb[2].mxu1 }
 0x2d7   :  { %v1031_v46 = vmul.f32 -1.442695, %v200_v42  ;;  %v198_v47 = vpop.f32.mrb[3].mxu1  ;;  %v327_v45 = vld [vmem:[%s1516_s0 + $0x30] sm:$0xff] }
 0x2d8   :  { %v1032_v48 = vmul.f32 -1.442695, %v201_v44 }
 0x2d9   :  { %1119 = vpow2.f32 %v1031_v46  ;;  %v328_v46 = vld [vmem:[%s1516_s0 + $0x38] sm:$0xff] }
 0x2da   :  { %1121 = vpow2.f32 %v1032_v48 }
 0x2e3   :  { %v1120_v49 = vpop.eup %1119 }
 0x2e4   :  { %v1122_v50 = vpop.eup %1121  ;;  %v208_v52 = vadd.f32 1.0, %v1120_v49 }
 0x2e5   :  { %v209_v51 = vadd.f32 1.0, %v1122_v50 }
 0x2e7   :  { %1123 = vrcp.f32 %v209_v51 }
 0x2e8   :  { %1125 = vrcp.f32 %v208_v52 }
 0x2f1   :  { %v1124_v53 = vpop.eup %1123 }
 0x2f2   :  { %v214_v54 = vmul.f32 2.0, %v1124_v53  ;;  %v1126_v56 = vpop.eup %1125 }
 0x2f3   :  { %v220_v59 = vmul.f32 %v1126_v56, %v218_v58 }
 0x2f4   :  { %v1033_v55 = vadd.f32 -1.0, %v214_v54 }
 0x2f6   :  { %v221_v57 = vmul.f32 %v1126_v56, %v1033_v55 }
 0x2f8   :  { %223 = vrot.lane.b32.xlu0 %v221_v57, %s1210_s12 }
 0x36a   :  { %v224_v60 = vpop.permute.xlu0 %223 }
 0x36b   :  { %v226_v61 = vadd.f32 %v224_v60, %v220_v59 }
 0x36d   :  { %1127 = vtanh.f32 %v226_v61  ;;  %231 = vrot.lane.b32.xlu0 %v226_v61, %s1210_s12 }
 0x377   :  { %v1128_v62 = vpop.eup %1127 }
 0x378   :  { %v228_v63 = vmul.f32 %v1128_v62, %v1124_v53 }
 0x37a   :  { %236 = vrot.lane.b32.xlu1 %v228_v63, %s1210_s12 }
 0x3df   :  { %v232_v9 = vpop.permute.xlu0 %231 }
 0x3e0   :  { %v234_v10 = vsel %vm229_vm2, %v232_v9, %v147_v35 }
 0x3e1   :  { %304 = vrot.lane.b32.xlu1 %v234_v10, %s1210_s12 }
 0x3ec   :  { %v237_v11 = vpop.permute.xlu1 %236 }
 0x3ed   :  { %v239_v12 = vsel %vm229_vm2, %v237_v11, %v152_v37 }
 0x3ee   :  { %v242_v13 = vpack.c.bf16 %v239_v12, %v239_v12 }
 0x3f0   :  { %1034 = vmatmul.mubr.msk.bf16.vlgmr.msra.gmra.mrb[4].mxu0 %vm72_vm1, %v242_v13 }
 0x3f1   :  { %421 = vmatpush1.bf16.msra.mxu0 %v1253_v2  ;;  %452 = vmatprep.mubr.bf16.mxu0 %v1209_v1 }
 0x3f2   :  { %422 = vmatprep.subr.bf16.mxu0 %v1259_v3 }
 0x3f5   :  { %423 = vmatpush1.bf16.msra.mxu0 %v1266_v4 }
 0x3f6   :  { %424 = vmatprep.subr.bf16.mxu0 %v1273_v5 }
 0x3f9   :  { %425 = vmatpush1.bf16.msra.mxu0 %v1280_v6 }
 0x3fa   :  { %426 = vmatprep.subr.bf16.mxu0 %v1287_v7 }
 0x3fd   :  { %427 = vmatpush1.bf16.msra.mxu0 %v1294_v8 }
 0x3fe   :  { %594 = vmatprep.subr.bf16.mxu0 %v1246_v0 }
 0x453   :  { %v305_v34 = vpop.permute.xlu1 %304 }
 0x4c3   :  { %v280_v16 = vpop.f32.mrb[4].mxu0 }
 0x4c4   :  { %v287_v17 = vadd.f32 %v280_v16, %v240_v14  ;;  %v282_v18 = vpop.f32.mrb[5].mxu0 }
 0x4c5   :  { %v288_v19 = vadd.f32 %v282_v18, %v241_v15  ;;  %v284_v20 = vpop.f32.mrb[6].mxu0 }
 0x4c6   :  { %v1035_v21 = vmul.f32 -1.442695, %v287_v17  ;;  %v285_v22 = vpop.f32.mrb[7].mxu0  ;;  %v414_v20 = vld [vmem:[%s1516_s0 + $0x40] sm:$0xff] }
 0x4c7   :  { %v1036_v23 = vmul.f32 -1.442695, %v288_v19 }
 0x4c8   :  { %1129 = vpow2.f32 %v1035_v21  ;;  %v415_v21 = vld [vmem:[%s1516_s0 + $0x48] sm:$0xff] }
 0x4c9   :  { %1131 = vpow2.f32 %v1036_v23 }
 0x4d2   :  { %v1130_v24 = vpop.eup %1129 }
 0x4d3   :  { %v1132_v25 = vpop.eup %1131  ;;  %v295_v27 = vadd.f32 1.0, %v1130_v24 }
 0x4d4   :  { %v296_v26 = vadd.f32 1.0, %v1132_v25 }
 0x4d6   :  { %1133 = vrcp.f32 %v296_v26 }
 0x4d7   :  { %1135 = vrcp.f32 %v295_v27 }
 0x4e0   :  { %v1134_v28 = vpop.eup %1133 }
 0x4e1   :  { %v301_v29 = vmul.f32 2.0, %v1134_v28  ;;  %v1136_v31 = vpop.eup %1135 }
 0x4e2   :  { %v307_v35 = vmul.f32 %v1136_v31, %v305_v34 }
 0x4e3   :  { %v1037_v30 = vadd.f32 -1.0, %v301_v29 }
 0x4e5   :  { %v308_v32 = vmul.f32 %v1136_v31, %v1037_v30 }
 0x4e7   :  { %310 = vrot.lane.b32.xlu0 %v308_v32, %s1210_s12 }
 0x559   :  { %v311_v36 = vpop.permute.xlu0 %310 }
 0x55a   :  { %v313_v37 = vadd.f32 %v311_v36, %v307_v35 }
 0x55c   :  { %1137 = vtanh.f32 %v313_v37  ;;  %318 = vrot.lane.b32.xlu0 %v313_v37, %s1210_s12 }
 0x566   :  { %v1138_v38 = vpop.eup %1137 }
 0x567   :  { %v315_v39 = vmul.f32 %v1138_v38, %v1134_v28 }
 0x569   :  { %323 = vrot.lane.b32.xlu1 %v315_v39, %s1210_s12 }
 0x5ce   :  { %v319_v40 = vpop.permute.xlu0 %318 }
 0x5cf   :  { %v321_v41 = vsel %vm316_vm3, %v319_v40, %v234_v10 }
 0x5d0   :  { %391 = vrot.lane.b32.xlu1 %v321_v41, %s1210_s12 }
 0x5db   :  { %v324_v42 = vpop.permute.xlu1 %323 }
 0x5dc   :  { %v326_v43 = vsel %vm316_vm3, %v324_v42, %v239_v12 }
 0x5dd   :  { %v329_v44 = vpack.c.bf16 %v326_v43, %v326_v43 }
 0x5df   :  { %1038 = vmatmul.mubr.msk.bf16.vlgmr.msra.gmra.mrb[4].mxu1 %vm72_vm1, %v329_v44 }
 0x5e0   :  { %508 = vmatpush1.bf16.msra.mxu1 %v1253_v2  ;;  %539 = vmatprep.mubr.bf16.mxu1 %v1209_v1 }
 0x5e1   :  { %509 = vmatprep.subr.bf16.mxu1 %v1259_v3 }
 0x5e4   :  { %510 = vmatpush1.bf16.msra.mxu1 %v1266_v4 }
 0x5e5   :  { %511 = vmatprep.subr.bf16.mxu1 %v1273_v5 }
 0x5e8   :  { %512 = vmatpush1.bf16.msra.mxu1 %v1280_v6 }
 0x5e9   :  { %513 = vmatprep.subr.bf16.mxu1 %v1287_v7 }
 0x5ec   :  { %514 = vmatpush1.bf16.msra.mxu1 %v1294_v8 }
 0x5ed   :  { %681 = vmatprep.subr.bf16.mxu1 %v1246_v0 }
 0x642   :  { %v392_v9 = vpop.permute.xlu1 %391 }
 0x6b2   :  { %v367_v47 = vpop.f32.mrb[4].mxu1 }
 0x6b3   :  { %v374_v48 = vadd.f32 %v367_v47, %v327_v45  ;;  %v369_v49 = vpop.f32.mrb[5].mxu1 }
 0x6b4   :  { %v375_v50 = vadd.f32 %v369_v49, %v328_v46  ;;  %v371_v51 = vpop.f32.mrb[6].mxu1 }
 0x6b5   :  { %v1039_v52 = vmul.f32 -1.442695, %v374_v48  ;;  %v372_v53 = vpop.f32.mrb[7].mxu1  ;;  %v501_v51 = vld [vmem:[%s1516_s0 + $0x50] sm:$0xff] }
 0x6b6   :  { %v1040_v54 = vmul.f32 -1.442695, %v375_v50 }
 0x6b7   :  { %1139 = vpow2.f32 %v1039_v52  ;;  %v502_v52 = vld [vmem:[%s1516_s0 + $0x58] sm:$0xff] }
 0x6b8   :  { %1141 = vpow2.f32 %v1040_v54 }
 0x6c1   :  { %v1140_v55 = vpop.eup %1139 }
 0x6c2   :  { %v1142_v56 = vpop.eup %1141  ;;  %v382_v58 = vadd.f32 1.0, %v1140_v55 }
 0x6c3   :  { %v383_v57 = vadd.f32 1.0, %v1142_v56 }
 0x6c5   :  { %1143 = vrcp.f32 %v383_v57 }
 0x6c6   :  { %1145 = vrcp.f32 %v382_v58 }
 0x6cf   :  { %v1144_v59 = vpop.eup %1143 }
 0x6d0   :  { %v388_v60 = vmul.f32 2.0, %v1144_v59  ;;  %v1146_v62 = vpop.eup %1145 }
 0x6d1   :  { %v394_v10 = vmul.f32 %v1146_v62, %v392_v9 }
 0x6d2   :  { %v1041_v61 = vadd.f32 -1.0, %v388_v60 }
 0x6d4   :  { %v395_v63 = vmul.f32 %v1146_v62, %v1041_v61 }
 0x6d6   :  { %397 = vrot.lane.b32.xlu0 %v395_v63, %s1210_s12 }
 0x748   :  { %v398_v11 = vpop.permute.xlu0 %397 }
 0x749   :  { %v400_v12 = vadd.f32 %v398_v11, %v394_v10 }
 0x74b   :  { %1147 = vtanh.f32 %v400_v12  ;;  %405 = vrot.lane.b32.xlu0 %v400_v12, %s1210_s12 }
 0x755   :  { %v1148_v13 = vpop.eup %1147 }
 0x756   :  { %v402_v14 = vmul.f32 %v1148_v13, %v1144_v59 }
 0x758   :  { %410 = vrot.lane.b32.xlu1 %v402_v14, %s1210_s12 }
 0x7bd   :  { %v406_v15 = vpop.permute.xlu0 %405 }
 0x7be   :  { %v408_v16 = vsel %vm403_vm4, %v406_v15, %v321_v41 }
 0x7bf   :  { %478 = vrot.lane.b32.xlu1 %v408_v16, %s1210_s12 }
 0x7ca   :  { %v411_v17 = vpop.permute.xlu1 %410 }
 0x7cb   :  { %v413_v18 = vsel %vm403_vm4, %v411_v17, %v326_v43 }
 0x7cc   :  { %v416_v19 = vpack.c.bf16 %v413_v18, %v413_v18 }
 0x7ce   :  { %1042 = vmatmul.mubr.msk.bf16.vlgmr.msra.gmra.mrb[8].mxu0 %vm72_vm1, %v416_v19 }
 0x7cf   :  { %595 = vmatpush1.bf16.msra.mxu0 %v1253_v2  ;;  %626 = vmatprep.mubr.bf16.mxu0 %v1209_v1 }
 0x7d0   :  { %596 = vmatprep.subr.bf16.mxu0 %v1259_v3 }
 0x7d3   :  { %597 = vmatpush1.bf16.msra.mxu0 %v1266_v4 }
 0x7d4   :  { %598 = vmatprep.subr.bf16.mxu0 %v1273_v5 }
 0x7d7   :  { %599 = vmatpush1.bf16.msra.mxu0 %v1280_v6 }
 0x7d8   :  { %600 = vmatprep.subr.bf16.mxu0 %v1287_v7 }
 0x7db   :  { %601 = vmatpush1.bf16.msra.mxu0 %v1294_v8 }
 0x7dc   :  { %768 = vmatprep.subr.bf16.mxu0 %v1246_v0 }
 0x831   :  { %v479_v40 = vpop.permute.xlu1 %478 }
 0x8a1   :  { %v454_v22 = vpop.f32.mrb[8].mxu0 }
 0x8a2   :  { %v461_v23 = vadd.f32 %v454_v22, %v414_v20  ;;  %v456_v24 = vpop.f32.mrb[9].mxu0 }
 0x8a3   :  { %v462_v25 = vadd.f32 %v456_v24, %v415_v21  ;;  %v458_v26 = vpop.f32.mrb[10].mxu0 }
 0x8a4   :  { %v1043_v27 = vmul.f32 -1.442695, %v461_v23  ;;  %v459_v28 = vpop.f32.mrb[11].mxu0  ;;  %v589_v26 = vld [vmem:[%s1516_s0 + $0x68] sm:$0xff] }
 0x8a5   :  { %v1044_v29 = vmul.f32 -1.442695, %v462_v25  ;;  %v588_v25 = vld [vmem:[%s1516_s0 + $0x60] sm:$0xff] }
 0x8a6   :  { %1149 = vpow2.f32 %v1043_v27 }
 0x8a7   :  { %1151 = vpow2.f32 %v1044_v29 }
 0x8b0   :  { %v1150_v30 = vpop.eup %1149 }
 0x8b1   :  { %v1152_v31 = vpop.eup %1151  ;;  %v469_v34 = vadd.f32 1.0, %v1150_v30 }
 0x8b2   :  { %v470_v32 = vadd.f32 1.0, %v1152_v31 }
 0x8b4   :  { %1153 = vrcp.f32 %v470_v32 }
 0x8b5   :  { %1155 = vrcp.f32 %v469_v34 }
 0x8be   :  { %v1154_v35 = vpop.eup %1153 }
 0x8bf   :  { %v475_v36 = vmul.f32 2.0, %v1154_v35  ;;  %v1156_v38 = vpop.eup %1155 }
 0x8c0   :  { %v481_v41 = vmul.f32 %v1156_v38, %v479_v40 }
 0x8c1   :  { %v1045_v37 = vadd.f32 -1.0, %v475_v36 }
 0x8c3   :  { %v482_v39 = vmul.f32 %v1156_v38, %v1045_v37 }
 0x8c5   :  { %484 = vrot.lane.b32.xlu0 %v482_v39, %s1210_s12 }
 0x937   :  { %v485_v42 = vpop.permute.xlu0 %484 }
 0x938   :  { %v487_v43 = vadd.f32 %v485_v42, %v481_v41 }
 0x93a   :  { %1157 = vtanh.f32 %v487_v43  ;;  %492 = vrot.lane.b32.xlu0 %v487_v43, %s1210_s12 }
 0x944   :  { %v1158_v44 = vpop.eup %1157 }
 0x945   :  { %v489_v45 = vmul.f32 %v1158_v44, %v1154_v35 }
 0x947   :  { %497 = vrot.lane.b32.xlu1 %v489_v45, %s1210_s12 }
 0x9ac   :  { %v493_v46 = vpop.permute.xlu0 %492 }
 0x9ad   :  { %v495_v47 = vsel %vm490_vm5, %v493_v46, %v408_v16 }
 0x9ae   :  { %565 = vrot.lane.b32.xlu1 %v495_v47, %s1210_s12 }
 0x9b9   :  { %v498_v48 = vpop.permute.xlu1 %497 }
 0x9ba   :  { %v500_v49 = vsel %vm490_vm5, %v498_v48, %v413_v18 }
 0x9bb   :  { %v503_v50 = vpack.c.bf16 %v500_v49, %v500_v49 }
 0x9bd   :  { %1046 = vmatmul.mubr.msk.bf16.vlgmr.msra.gmra.mrb[8].mxu1 %vm72_vm1, %v503_v50 }
 0x9be   :  { %682 = vmatpush1.bf16.msra.mxu1 %v1253_v2  ;;  %713 = vmatprep.mubr.bf16.mxu1 %v1209_v1 }
 0x9bf   :  { %683 = vmatprep.subr.bf16.mxu1 %v1259_v3 }
 0x9c2   :  { %684 = vmatpush1.bf16.msra.mxu1 %v1266_v4 }
 0x9c3   :  { %685 = vmatprep.subr.bf16.mxu1 %v1273_v5 }
 0x9c6   :  { %686 = vmatpush1.bf16.msra.mxu1 %v1280_v6 }
 0x9c7   :  { %687 = vmatprep.subr.bf16.mxu1 %v1287_v7 }
 0x9ca   :  { %688 = vmatpush1.bf16.msra.mxu1 %v1294_v8 }
 0x9cb   :  { %855 = vmatprep.subr.bf16.mxu1 %v1246_v0 }
 0xa20   :  { %v566_v14 = vpop.permute.xlu1 %565 }
 0xa90   :  { %v541_v53 = vpop.f32.mrb[8].mxu1 }
 0xa91   :  { %v548_v54 = vadd.f32 %v541_v53, %v501_v51  ;;  %v543_v55 = vpop.f32.mrb[9].mxu1 }
 0xa92   :  { %v549_v56 = vadd.f32 %v543_v55, %v502_v52  ;;  %v545_v57 = vpop.f32.mrb[10].mxu1 }
 0xa93   :  { %v1047_v58 = vmul.f32 -1.442695, %v548_v54  ;;  %v546_v59 = vpop.f32.mrb[11].mxu1 }
 0xa94   :  { %v1048_v60 = vmul.f32 -1.442695, %v549_v56  ;;  %v675_v56 = vld [vmem:[%s1516_s0 + $0x70] sm:$0xff] }
 0xa95   :  { %1159 = vpow2.f32 %v1047_v58 }
 0xa96   :  { %1161 = vpow2.f32 %v1048_v60 }
 0xa9f   :  { %v1160_v61 = vpop.eup %1159 }
 0xaa0   :  { %v1162_v0 = vpop.eup %1161  ;;  %v556_v63 = vadd.f32 1.0, %v1160_v61 }
 0xaa1   :  { %v557_v62 = vadd.f32 1.0, %v1162_v0 }
 0xaa3   :  { %1163 = vrcp.f32 %v557_v62 }
 0xaa4   :  { %1165 = vrcp.f32 %v556_v63 }
 0xaad   :  { %v1164_v9 = vpop.eup %1163 }
 0xaae   :  { %v562_v10 = vmul.f32 2.0, %v1164_v9  ;;  %v1166_v12 = vpop.eup %1165 }
 0xaaf   :  { %v568_v15 = vmul.f32 %v1166_v12, %v566_v14 }
 0xab0   :  { %v1049_v11 = vadd.f32 -1.0, %v562_v10 }
 0xab2   :  { %v569_v13 = vmul.f32 %v1166_v12, %v1049_v11 }
 0xab4   :  { %571 = vrot.lane.b32.xlu0 %v569_v13, %s1210_s12 }
 0xb26   :  { %v572_v16 = vpop.permute.xlu0 %571 }
 0xb27   :  { %v574_v17 = vadd.f32 %v572_v16, %v568_v15 }
 0xb29   :  { %1167 = vtanh.f32 %v574_v17  ;;  %579 = vrot.lane.b32.xlu0 %v574_v17, %s1210_s12 }
 0xb33   :  { %v1168_v18 = vpop.eup %1167 }
 0xb34   :  { %v576_v19 = vmul.f32 %v1168_v18, %v1164_v9 }
 0xb36   :  { %584 = vrot.lane.b32.xlu1 %v576_v19, %s1210_s12 }
 0xb9b   :  { %v580_v20 = vpop.permute.xlu0 %579 }
 0xb9c   :  { %v582_v21 = vsel %vm577_vm6, %v580_v20, %v495_v47 }
 0xb9d   :  { %652 = vrot.lane.b32.xlu1 %v582_v21, %s1210_s12 }
 0xba8   :  { %v585_v22 = vpop.permute.xlu1 %584 }
 0xba9   :  { %v587_v23 = vsel %vm577_vm6, %v585_v22, %v500_v49  ;;  %v762_v22 = vld [vmem:[%s1516_s0 + $0x80] sm:$0xff] }
 0xbaa   :  { %v590_v24 = vpack.c.bf16 %v587_v23, %v587_v23 }
 0xbac   :  { %1050 = vmatmul.mubr.msk.bf16.vlgmr.msra.gmra.mrb[12].mxu0 %vm72_vm1, %v590_v24 }
 0xbad   :  { %769 = vmatpush1.bf16.msra.mxu0 %v1253_v2  ;;  %800 = vmatprep.mubr.bf16.mxu0 %v1209_v1 }
 0xbae   :  { %770 = vmatprep.subr.bf16.mxu0 %v1259_v3 }
 0xbb1   :  { %771 = vmatpush1.bf16.msra.mxu0 %v1266_v4 }
 0xbb2   :  { %772 = vmatprep.subr.bf16.mxu0 %v1273_v5 }
 0xbb5   :  { %773 = vmatpush1.bf16.msra.mxu0 %v1280_v6 }
 0xbb6   :  { %774 = vmatprep.subr.bf16.mxu0 %v1287_v7 }
 0xbb9   :  { %775 = vmatpush1.bf16.msra.mxu0 %v1294_v8 }
 0xc0f   :  { %v653_v45 = vpop.permute.xlu1 %652 }
 0xc7f   :  { %v628_v27 = vpop.f32.mrb[12].mxu0 }
 0xc80   :  { %v635_v28 = vadd.f32 %v628_v27, %v588_v25  ;;  %v630_v29 = vpop.f32.mrb[13].mxu0 }
 0xc81   :  { %v636_v30 = vadd.f32 %v630_v29, %v589_v26  ;;  %v632_v31 = vpop.f32.mrb[14].mxu0 }
 0xc82   :  { %v1051_v32 = vmul.f32 -1.442695, %v635_v28  ;;  %v633_v34 = vpop.f32.mrb[15].mxu0 }
 0xc83   :  { %v1052_v35 = vmul.f32 -1.442695, %v636_v30 }
 0xc84   :  { %1169 = vpow2.f32 %v1051_v32 }
 0xc85   :  { %1171 = vpow2.f32 %v1052_v35 }
 0xc8e   :  { %v1170_v36 = vpop.eup %1169 }
 0xc8f   :  { %v1172_v37 = vpop.eup %1171  ;;  %v643_v39 = vadd.f32 1.0, %v1170_v36 }
 0xc90   :  { %v644_v38 = vadd.f32 1.0, %v1172_v37 }
 0xc92   :  { %1173 = vrcp.f32 %v644_v38 }
 0xc93   :  { %1175 = vrcp.f32 %v643_v39 }
 0xc9c   :  { %v1174_v40 = vpop.eup %1173 }
 0xc9d   :  { %v649_v41 = vmul.f32 2.0, %v1174_v40  ;;  %v1176_v43 = vpop.eup %1175 }
 0xc9e   :  { %v655_v46 = vmul.f32 %v1176_v43, %v653_v45 }
 0xc9f   :  { %v1053_v42 = vadd.f32 -1.0, %v649_v41 }
 0xca1   :  { %v656_v44 = vmul.f32 %v1176_v43, %v1053_v42 }
 0xca3   :  { %658 = vrot.lane.b32.xlu0 %v656_v44, %s1210_s12 }
 0xd15   :  { %v659_v47 = vpop.permute.xlu0 %658 }
 0xd16   :  { %v661_v48 = vadd.f32 %v659_v47, %v655_v46 }
 0xd18   :  { %1177 = vtanh.f32 %v661_v48  ;;  %666 = vrot.lane.b32.xlu0 %v661_v48, %s1210_s12 }
 0xd22   :  { %v1178_v49 = vpop.eup %1177 }
 0xd23   :  { %v663_v50 = vmul.f32 %v1178_v49, %v1174_v40 }
 0xd25   :  { %671 = vrot.lane.b32.xlu1 %v663_v50, %s1210_s12 }
 0xd8a   :  { %v667_v51 = vpop.permute.xlu0 %666 }
 0xd8b   :  { %v669_v52 = vsel %vm664_vm7, %v667_v51, %v582_v21 }
 0xd8c   :  { %739 = vrot.lane.b32.xlu1 %v669_v52, %s1210_s12 }
 0xd97   :  { %v672_v53 = vpop.permute.xlu1 %671 }
 0xd98   :  { %v674_v54 = vsel %vm664_vm7, %v672_v53, %v587_v23  ;;  %v763_v23 = vld [vmem:[%s1516_s0 + $0x88] sm:$0xff]  ;;  %v849_v53 = vld [vmem:[%s1516_s0 + $0x90] sm:$0xff] }
 0xd99   :  { %v677_v55 = vpack.c.bf16 %v674_v54, %v674_v54 }
 0xd9b   :  { %1054 = vmatmul.mubr.msk.bf16.vlgmr.msra.gmra.mrb[12].mxu1 %vm72_vm1, %v677_v55 }
 0xd9c   :  { %856 = vmatpush1.bf16.msra.mxu1 %v1253_v2  ;;  %887 = vmatprep.mubr.bf16.mxu1 %v1209_v1  ;;  %v676_v1 = vld [vmem:[%s1516_s0 + $0x78] sm:$0xff] }
 0xd9d   :  { %857 = vmatprep.subr.bf16.mxu1 %v1259_v3 }
 0xda0   :  { %858 = vmatpush1.bf16.msra.mxu1 %v1266_v4 }
 0xda1   :  { %859 = vmatprep.subr.bf16.mxu1 %v1273_v5 }
 0xda4   :  { %860 = vmatpush1.bf16.msra.mxu1 %v1280_v6 }
 0xda5   :  { %861 = vmatprep.subr.bf16.mxu1 %v1287_v7 }
 0xda8   :  { %862 = vmatpush1.bf16.msra.mxu1 %v1294_v8 }
 0xdfe   :  { %v740_v11 = vpop.permute.xlu1 %739 }
 0xe6e   :  { %v715_v2 = vpop.f32.mrb[12].mxu1 }
 0xe6f   :  { %v722_v3 = vadd.f32 %v715_v2, %v675_v56  ;;  %v717_v57 = vpop.f32.mrb[13].mxu1 }
 0xe70   :  { %v723_v4 = vadd.f32 %v717_v57, %v676_v1  ;;  %v719_v58 = vpop.f32.mrb[14].mxu1 }
 0xe71   :  { %v1055_v5 = vmul.f32 -1.442695, %v722_v3  ;;  %v720_v59 = vpop.f32.mrb[15].mxu1 }
 0xe72   :  { %v1056_v6 = vmul.f32 -1.442695, %v723_v4 }
 0xe73   :  { %1179 = vpow2.f32 %v1055_v5 }
 0xe74   :  { %1181 = vpow2.f32 %v1056_v6 }
 0xe7d   :  { %v1180_v7 = vpop.eup %1179 }
 0xe7e   :  { %v1182_v8 = vpop.eup %1181  ;;  %v730_v61 = vadd.f32 1.0, %v1180_v7 }
 0xe7f   :  { %v731_v60 = vadd.f32 1.0, %v1182_v8 }
 0xe81   :  { %1183 = vrcp.f32 %v731_v60 }
 0xe82   :  { %1185 = vrcp.f32 %v730_v61 }
 0xe8b   :  { %v1184_v0 = vpop.eup %1183 }
 0xe8c   :  { %v736_v62 = vmul.f32 2.0, %v1184_v0  ;;  %v1186_v9 = vpop.eup %1185 }
 0xe8d   :  { %v742_v12 = vmul.f32 %v1186_v9, %v740_v11  ;;  %v1107_v11 = vld [vmem:[%s1518_s3 + $0x10] sm:$0xff]  }
 0xe8e   :  { %v1057_v63 = vadd.f32 -1.0, %v736_v62 }
 0xe90   :  { %v743_v10 = vmul.f32 %v1186_v9, %v1057_v63  ;;  %v1211_v63 = vmov 0.0   ;;  %v1105_v9 = vld [vmem:[%s1518_s3] sm:$0xff]  }
 0xe91   :  { %1077 = vmatprep.subr.bf16.mxu0 %v1211_v63 }
 0xe92   :  { %745 = vrot.lane.b32.xlu0 %v743_v10, %s1210_s12  ;;  %v1106_v10 = vld [vmem:[%s1518_s3 + $0x8] sm:$0xff]  }
 0xf04   :  { %v746_v13 = vpop.permute.xlu0 %745 }
 0xf05   :  { %v748_v14 = vadd.f32 %v746_v13, %v742_v12 }
 0xf07   :  { %1187 = vtanh.f32 %v748_v14  ;;  %753 = vrot.lane.b32.xlu0 %v748_v14, %s1210_s12 }
 0xf11   :  { %v1188_v15 = vpop.eup %1187 }
 0xf12   :  { %v750_v16 = vmul.f32 %v1188_v15, %v1184_v0 }
 0xf14   :  { %758 = vrot.lane.b32.xlu1 %v750_v16, %s1210_s12  ;;  %v1108_v16 = vld [vmem:[%s1518_s3 + $0x18] sm:$0xff]  }
 0xf79   :  { %v754_v17 = vpop.permute.xlu0 %753 }
 0xf7a   :  { %v756_v18 = vsel %vm751_vm8, %v754_v17, %v669_v52 }
 0xf7b   :  { %826 = vrot.lane.b32.xlu1 %v756_v18, %s1210_s12 }
 0xf86   :  { %v759_v19 = vpop.permute.xlu1 %758 }
 0xf87   :  { %v761_v20 = vsel %vm751_vm8, %v759_v19, %v674_v54  ;;  %v850_v54 = vld [vmem:[%s1516_s0 + $0x98] sm:$0xff] }
 0xf88   :  { %v764_v21 = vpack.c.bf16 %v761_v20, %v761_v20 }
 0xf8a   :  { %1058 = vmatmul.mubr.msk.bf16.vlgmr.msra.gmra.mrb[16].mxu0 %vm72_vm1, %v764_v21 }
 0xf8b   :  { %1078 = vmatpush3.bf16.msra.mxu0 %v1105_v9  ;;  %1085 = vmatprep.mubr.msk.bf16.mxu0 %vm1212_vm10, %v1211_v63 }
 0xf8c   :  { %1079 = vmatprep.subr.bf16.mxu0 %v1211_v63 }
 0xf8f   :  { %1080 = vmatpush3.bf16.msra.mxu0 %v1106_v10 }
 0xf90   :  { %1081 = vmatprep.subr.bf16.mxu0 %v1211_v63 }
 0xf93   :  { %1082 = vmatpush3.bf16.msra.mxu0 %v1107_v11 }
 0xf94   :  { %1083 = vmatprep.subr.bf16.mxu0 %v1211_v63 }
 0xf97   :  { %1084 = vmatpush3.bf16.msra.mxu0 %v1108_v16 }
 0xfed   :  { %v827_v42 = vpop.permute.xlu1 %826 }
0x105d   :  { %v802_v24 = vpop.f32.mrb[16].mxu0 }
0x105e   :  { %v809_v25 = vadd.f32 %v802_v24, %v762_v22  ;;  %v804_v26 = vpop.f32.mrb[17].mxu0  ;;  %v1066_v22 = vld [vmem:[%s1519_s4] ss:$0 sm:$0xff] }
0x105f   :  { %v810_v27 = vadd.f32 %v804_v26, %v763_v23  ;;  %v806_v28 = vpop.f32.mrb[18].mxu0 }
0x1060   :  { %v1059_v29 = vmul.f32 -1.442695, %v809_v25  ;;  %v807_v30 = vpop.f32.mrb[19].mxu0 }
0x1061   :  { %v1060_v31 = vmul.f32 -1.442695, %v810_v27 }
0x1062   :  { %1189 = vpow2.f32 %v1059_v29 }
0x1063   :  { %1191 = vpow2.f32 %v1060_v31 }
0x106c   :  { %v1190_v32 = vpop.eup %1189 }
0x106d   :  { %v1192_v34 = vpop.eup %1191  ;;  %v817_v36 = vadd.f32 1.0, %v1190_v32 }
0x106e   :  { %v818_v35 = vadd.f32 1.0, %v1192_v34 }
0x1070   :  { %1193 = vrcp.f32 %v818_v35 }
0x1071   :  { %1195 = vrcp.f32 %v817_v36 }
0x107a   :  { %v1194_v37 = vpop.eup %1193 }
0x107b   :  { %v823_v38 = vmul.f32 2.0, %v1194_v37  ;;  %v1196_v40 = vpop.eup %1195 }
0x107c   :  { %v829_v43 = vmul.f32 %v1196_v40, %v827_v42 }
0x107d   :  { %v1061_v39 = vadd.f32 -1.0, %v823_v38 }
0x107f   :  { %v830_v41 = vmul.f32 %v1196_v40, %v1061_v39 }
0x1081   :  { %832 = vrot.lane.b32.xlu0 %v830_v41, %s1210_s12 }
0x10f3   :  { %v833_v44 = vpop.permute.xlu0 %832 }
0x10f4   :  { %v835_v45 = vadd.f32 %v833_v44, %v829_v43 }
0x10f6   :  { %1197 = vtanh.f32 %v835_v45  ;;  %840 = vrot.lane.b32.xlu0 %v835_v45, %s1210_s12 }
0x1100   :  { %v1198_v46 = vpop.eup %1197 }
0x1101   :  { %v837_v47 = vmul.f32 %v1198_v46, %v1194_v37 }
0x1103   :  { %845 = vrot.lane.b32.xlu1 %v837_v47, %s1210_s12 }
0x1168   :  { %v841_v48 = vpop.permute.xlu0 %840 }
0x1169   :  { %v843_v49 = vsel %vm838_vm9, %v841_v48, %v756_v18 }
0x116a   :  { %913 = vrot.lane.b32.xlu1 %v843_v49, %s1210_s12 }
0x1175   :  { %v846_v50 = vpop.permute.xlu1 %845 }
0x1176   :  { %v848_v51 = vsel %vm838_vm9, %v846_v50, %v761_v20 }
0x1177   :  { %v851_v52 = vpack.c.bf16 %v848_v51, %v848_v51 }
0x1179   :  { %1062 = vmatmul.mubr.msk.bf16.vlgmr.msra.gmra.mrb[16].mxu1 %vm72_vm1, %v851_v52 }
0x11dc   :  { %v914_v12 = vpop.permute.xlu1 %913 }
0x124c   :  { %v889_v55 = vpop.f32.mrb[16].mxu1 }
0x124d   :  { %v896_v56 = vadd.f32 %v889_v55, %v849_v53  ;;  %v891_v1 = vpop.f32.mrb[17].mxu1 }
0x124e   :  { %v897_v2 = vadd.f32 %v891_v1, %v850_v54  ;;  %v893_v3 = vpop.f32.mrb[18].mxu1 }
0x124f   :  { %v1063_v57 = vmul.f32 -1.442695, %v896_v56  ;;  %v894_v4 = vpop.f32.mrb[19].mxu1 }
0x1250   :  { %v1064_v58 = vmul.f32 -1.442695, %v897_v2 }
0x1251   :  { %1199 = vpow2.f32 %v1063_v57 }
0x1252   :  { %1201 = vpow2.f32 %v1064_v58 }
0x125b   :  { %v1200_v5 = vpop.eup %1199 }
0x125c   :  { %v1202_v59 = vpop.eup %1201  ;;  %v904_v7 = vadd.f32 1.0, %v1200_v5 }
0x125d   :  { %v905_v6 = vadd.f32 1.0, %v1202_v59 }
0x125f   :  { %1203 = vrcp.f32 %v905_v6 }
0x1260   :  { %1205 = vrcp.f32 %v904_v7 }
0x1269   :  { %v1204_v8 = vpop.eup %1203 }
0x126a   :  { %v910_v60 = vmul.f32 2.0, %v1204_v8  ;;  %v1206_v0 = vpop.eup %1205 }
0x126b   :  { %v916_v13 = vmul.f32 %v1206_v0, %v914_v12 }
0x126c   :  { %v1065_v61 = vadd.f32 -1.0, %v910_v60 }
0x126e   :  { %v917_v62 = vmul.f32 %v1206_v0, %v1065_v61 }
0x1270   :  { %919 = vrot.lane.b32.xlu0 %v917_v62, %s1210_s12 }
0x12e2   :  { %v920_v14 = vpop.permute.xlu0 %919 }
0x12e3   :  { %v922_v15 = vadd.f32 %v920_v14, %v916_v13 }
0x12e5   :  { %1207 = vtanh.f32 %v922_v15 }
0x12ef   :  { %v1208_v17 = vpop.eup %1207 }
0x12f0   :  { %v924_v18 = vmul.f32 %v1208_v17, %v1204_v8 }
0x12f2   :  { %927 = vrot.lane.b32.xlu1 %v924_v18, %s1210_s12 }
0x1364   :  { %v928_v19 = vpop.permute.xlu1 %927 }
0x1365   :  { %v930_v20 = vsel %vm925_vm11, %v928_v19, %v848_v51 }
0x1366   :  { %v931_v21 = vpack.c.bf16 %v930_v20, %v930_v20 }
0x1368   :  { %1086 = vmatmul.mubr.msk.bf16.vlgmr.msra.gmra.mrb[20].mxu0 %vm72_vm1, %v931_v21 }
0x143b   :  { %v1008_v23 = vpop.f32.mrb[20].mxu0 }
0x143c   :  { %v1009_v24 = vadd.f32 %v1066_v22, %v1008_v23  ;;  %v1087_v25 = vpop.f32.mrb[21].mxu0 }
0x143d   :  { %v1011_v26 = vpop.f32.mrb[22].mxu0 }
0x143e   :  { %1014 = vst [vmem:[%s1520_s5] sm:$0xff] %v1009_v24  ;;  %v1088_v27 = vpop.f32.mrb[23].mxu0 }

</bundles_post_ra>
